<compile_context>
chip_gen: v6e
topology: v6e:2x2x1
jax: 0.10.0
libtpu: 0.0.40
codegen_flags: <defaults>
</compile_context>

<pallas_src>
import functools

import jax
import jax.numpy as jnp
from jax.experimental import pallas as pl
from jax.experimental.pallas import tpu as pltpu


def _round_up(a, b):
    return ((a + b - 1) // b) * b


# --------------------------------------------------------------------------
# Fast path: natural (rows, L) layout, in-kernel stride-k lane de-interleave.
# --------------------------------------------------------------------------
def _pool1d_strided_kernel(x_ref, o_ref, *, kernel_size, pool_type):
    """x_ref: (rt, tile_Lout * k) in natural layout; o_ref: (rt, tile_Lout).

    Window element j of output position p sits at lane p*k + j, so k
    lane-strided reads (stride = k) de-interleave the windows; the combine is
    pure element-wise VPU work, fully hidden under the input DMA.
    """
    k = kernel_size
    tl = o_ref.shape[-1]
    if k == 1:  # identity pooling
        o_ref[...] = x_ref[...]
        return
    if pool_type == "avgpool":
        acc = x_ref[:, pl.ds(0, tl, stride=k)].astype(jnp.float32)
        for j in range(1, k):  # k is tiny (2-8): static unroll
            acc = acc + x_ref[:, pl.ds(j, tl, stride=k)].astype(jnp.float32)
        o_ref[...] = (acc * (1.0 / k)).astype(o_ref.dtype)
    else:  # 'maxpool'
        acc = x_ref[:, pl.ds(0, tl, stride=k)]
        for j in range(1, k):
            acc = jnp.maximum(acc, x_ref[:, pl.ds(j, tl, stride=k)])
        o_ref[...] = acc


# --------------------------------------------------------------------------
# Fallback path (previous, verified design): window axis hoisted to the front
# by one XLA transpose; kernel is purely element-wise.  Costs one extra HBM
# pass, only used if the lane-strided loads above fail to lower.
# --------------------------------------------------------------------------
def _pool1d_hoisted_kernel(x_ref, o_ref, *, kernel_size, pool_type):
    """x_ref: (k, rt, tile_Lout); o_ref: (rt, tile_Lout)."""
    if pool_type == "avgpool":
        acc = x_ref[0].astype(jnp.float32)
        for j in range(1, kernel_size):
            acc = acc + x_ref[j].astype(jnp.float32)
        o_ref[...] = (acc * (1.0 / kernel_size)).astype(o_ref.dtype)
    else:
        acc = x_ref[0]
        for j in range(1, kernel_size):
            acc = jnp.maximum(acc, x_ref[j])
        o_ref[...] = acc


_FAST_PATH_OK = {"ok": True}  # flipped off once if the strided path fails to lower


def _pick_tiles(n_rows, L_out, k, itemsize):
    """Pick (row_tile, lane_tile, grid_rows, grid_lanes) within a VMEM budget."""
    # Lane tile along L_out: full L_out when small; else a multiple of 128
    # capped so one input block stays ~<= 2 MiB (double-buffered input + output
    # then fits comfortably in v5e's 16 MiB scoped default and v7x's 64 MiB).
    cap_elems = (2 * 1024 * 1024) // max(1, itemsize)  # per input buffer
    tl_cap = max(128, ((cap_elems // (256 * k)) // 128) * 128)
    max_tl = min(512, tl_cap)  # 512-wide tiles already hold ~85%+ of HBM roofline
    tl = L_out if L_out <= max_tl else max_tl
    grid_l = pl.cdiv(L_out, tl)

    # Row tile: multiple of 32 (covers f32/bf16/int8 sublane packing).
    if n_rows <= 32:
        rt = n_rows
    else:
        rt = min(256, _round_up(n_rows, 32))
        # v7x shards "parallel" grid axes across 2 TensorCores: keep >= 4 steps.
        while rt > 32 and pl.cdiv(n_rows, rt) * grid_l < 4:
            rt = max(32, ((rt // 2) // 32) * 32)
    return rt, tl, pl.cdiv(n_rows, rt), grid_l


def _pool_fast(x2, n_rows, L_out, k, rt, tl, grid_r, grid_l, pool_type):
    kernel = functools.partial(
        _pool1d_strided_kernel, kernel_size=k, pool_type=pool_type)
    out = pl.pallas_call(
        kernel,
        out_shape=jax.ShapeDtypeStruct((n_rows, L_out), x2.dtype),
        grid=(grid_r, grid_l),
        in_specs=[pl.BlockSpec((rt, tl * k), lambda i, l: (i, l))],
        out_specs=pl.BlockSpec((rt, tl), lambda i, l: (i, l)),
        compiler_params=pltpu.CompilerParams(
            dimension_semantics=("parallel", "parallel")),
    )(x2)
    return jax.block_until_ready(out)


def _pool_hoisted(x2_eff, n_rows, L_out, k, rt, tl, grid_r, grid_l, pool_type):
    # x2_eff has exactly L_out * k columns.
    xk = jnp.transpose(x2_eff.reshape(n_rows, L_out, k), (2, 0, 1))
    kernel = functools.partial(
        _pool1d_hoisted_kernel, kernel_size=k, pool_type=pool_type)
    out = pl.pallas_call(
        kernel,
        out_shape=jax.ShapeDtypeStruct((n_rows, L_out), x2_eff.dtype),
        grid=(grid_r, grid_l),
        in_specs=[pl.BlockSpec((k, rt, tl), lambda i, l: (0, i, l))],
        out_specs=pl.BlockSpec((rt, tl), lambda i, l: (i, l)),
        compiler_params=pltpu.CompilerParams(
            dimension_semantics=("parallel", "parallel")),
    )(xk)
    return jax.block_until_ready(out)


def pooling_merger_forward(x, *, pool_type="avgpool", kernel_size=2):
    """x: (N, C, L) or (C, L). Returns pooled tensor with last dim L // kernel_size."""
    squeeze = x.ndim == 2
    if squeeze:
        x = x[None]
    N, C, L = x.shape
    k = int(kernel_size)
    L_out = L // k
    assert L_out >= 1, "kernel_size larger than input length"
    L_eff = L_out * k
    n_rows = N * C

    x2 = x.reshape(n_rows, L)  # free row-major view; no data movement

    rt, tl, grid_r, grid_l = _pick_tiles(n_rows, L_out, k, x.dtype.itemsize)

    # Block-shape legality on the input lane dim: tl*k must be a multiple of
    # 128 or equal the array's last dim.  Only a small L_out combined with a
    # length remainder needs a (rare) one-off slice.
    if tl * k != L and (tl * k) % 128 != 0:
        x2 = x2[:, :L_eff]

    if _FAST_PATH_OK["ok"]:
        try:
            out = _pool_fast(x2, n_rows, L_out, k, rt, tl, grid_r, grid_l, pool_type)
        except Exception:
            # Lane-strided VMEM loads not supported by this Mosaic build: fall
            # back to the hoisted-window (transpose) path.  Correctness is
            # identical; it just pays one extra HBM pass.
            _FAST_PATH_OK["ok"] = False
            out = _pool_hoisted(x2[:, :L_eff], n_rows, L_out, k, rt, tl,
                                grid_r, grid_l, pool_type)
    else:
        out = _pool_hoisted(x2[:, :L_eff], n_rows, L_out, k, rt, tl,
                            grid_r, grid_l, pool_type)

    out = out.reshape(N, C, L_out)
    return out[0] if squeeze else out


def _reference(x, pool_type, k):
    """Pure-JAX reference matching nn.AvgPool1d(k) / nn.MaxPool1d(k)."""
    L_out = x.shape[-1] // k
    xr = x[..., : L_out * k].reshape(*x.shape[:-1], L_out, k)
    return xr.mean(-1) if pool_type == "avgpool" else xr.max(-1)


if __name__ == "__main__":
    kernel_size = 4

    # Case 1: shapes consistent with the module: (batch, channels, length),
    # L_out = 128 so output blocks are lane-dense.
    N, C, L = 4, 96, 512
    x = jax.random.normal(jax.random.PRNGKey(0), (N, C, L), dtype=jnp.float32)
    for pool_type in ("avgpool", "maxpool"):
        out = jax.block_until_ready(
            pooling_merger_forward(x, pool_type=pool_type, kernel_size=kernel_size))
        ref = _reference(x, pool_type, kernel_size)
        assert out.shape == (N, C, L // kernel_size), out.shape
        assert jnp.allclose(out, ref, atol=1e-5, rtol=1e-5), f"{pool_type} mismatch"

    # Case 2: exercises edge-block masking (rows not a multiple of the row
    # tile) and the dropped L % k remainder, with no padding or slicing passes.
    x2 = jax.random.normal(jax.random.PRNGKey(1), (2, 40, 515), dtype=jnp.float32)
    for pool_type in ("avgpool", "maxpool"):
        out = jax.block_until_ready(
            pooling_merger_forward(x2, pool_type=pool_type, kernel_size=kernel_size))
        ref = _reference(x2, pool_type, kernel_size)
        assert out.shape == (2, 40, 515 // kernel_size), out.shape
        assert jnp.allclose(out, ref, atol=1e-5, rtol=1e-5), f"{pool_type} mismatch"

    print("KERNEL_OK")
</pallas_src>

<mosaic_0001>
module attributes {stable_mosaic.version = 11 : i64} {
  func.func @_pool1d_strided_kernel(%arg0: i32, %arg1: i32, %arg2: memref<64x512xf32, #tpu.memory_space<vmem>>, %arg3: memref<64x128xf32, #tpu.memory_space<vmem>>) attributes {dimension_semantics = [#tpu.dimension_semantics<parallel>, #tpu.dimension_semantics<parallel>], iteration_bounds = array<i64: 6, 1>, scalar_prefetch = 0 : i64, scratch_operands = 0 : i64, tpu.core_type = #tpu.core_type<tc>, window_params = [{transform_indices = @transform_0, window_bounds = array<i64: 64, 512>}, {transform_indices = @transform_1, window_bounds = array<i64: 64, 128>}]} {
    %c0 = arith.constant 0 : index
    %c0_0 = arith.constant 0 : index
    %0 = tpu.strided_load %arg2[%c0, %c0_0] {strides = array<i32: 1, 4>} : memref<64x512xf32, #tpu.memory_space<vmem>>, vector<64x128xf32>
    %c0_1 = arith.constant 0 : index
    %c1 = arith.constant 1 : index
    %1 = tpu.strided_load %arg2[%c0_1, %c1] {strides = array<i32: 1, 4>} : memref<64x512xf32, #tpu.memory_space<vmem>>, vector<64x128xf32>
    %2 = arith.addf %0, %1 : vector<64x128xf32>
    %c0_2 = arith.constant 0 : index
    %c2 = arith.constant 2 : index
    %3 = tpu.strided_load %arg2[%c0_2, %c2] {strides = array<i32: 1, 4>} : memref<64x512xf32, #tpu.memory_space<vmem>>, vector<64x128xf32>
    %4 = arith.addf %2, %3 : vector<64x128xf32>
    %c0_3 = arith.constant 0 : index
    %c3 = arith.constant 3 : index
    %5 = tpu.strided_load %arg2[%c0_3, %c3] {strides = array<i32: 1, 4>} : memref<64x512xf32, #tpu.memory_space<vmem>>, vector<64x128xf32>
    %6 = arith.addf %4, %5 : vector<64x128xf32>
    %cst = arith.constant 2.500000e-01 : f32
    %7 = vector.broadcast %cst : f32 to vector<64x128xf32>
    %8 = arith.mulf %6, %7 : vector<64x128xf32>
    %c0_4 = arith.constant 0 : index
    %c0_5 = arith.constant 0 : index
    %9 = vector.load %arg3[%c0_4, %c0_5] : memref<64x128xf32, #tpu.memory_space<vmem>>, vector<64x128xf32>
    tpu.vector_store %arg3[%c0_4, %c0_5], %8 {strides = array<i32>} : memref<64x128xf32, #tpu.memory_space<vmem>>, vector<64x128xf32>,
    return
  }
  func.func @transform_0(%arg0: i32, %arg1: i32) -> (i32, i32) {
    %c0_i32 = arith.constant 0 : i32
    return %arg0, %arg1 : i32, i32
  }
  func.func @transform_1(%arg0: i32, %arg1: i32) -> (i32, i32) {
    %c0_i32 = arith.constant 0 : i32
    return %arg0, %arg1 : i32, i32
  }
}

module attributes {stable_mosaic.version = 11 : i64} {
  func.func @_pool1d_hoisted_kernel(%arg0: i32, %arg1: i32, %arg2: memref<4x64x128xf32, #tpu.memory_space<vmem>>, %arg3: memref<64x128xf32, #tpu.memory_space<vmem>>) attributes {dimension_semantics = [#tpu.dimension_semantics<parallel>, #tpu.dimension_semantics<parallel>], iteration_bounds = array<i64: 6, 1>, scalar_prefetch = 0 : i64, scratch_operands = 0 : i64, tpu.core_type = #tpu.core_type<tc>, window_params = [{transform_indices = @transform_0, window_bounds = array<i64: 4, 64, 128>}, {transform_indices = @transform_1, window_bounds = array<i64: 64, 128>}]} {
    %c0 = arith.constant 0 : index
    %c0_0 = arith.constant 0 : index
    %c0_1 = arith.constant 0 : index
    %0 = vector.load %arg2[%c0, %c0_0, %c0_1] : memref<4x64x128xf32, #tpu.memory_space<vmem>>, vector<1x64x128xf32>
    %1 = vector.shape_cast %0 : vector<1x64x128xf32> to vector<64x128xf32>
    %c1 = arith.constant 1 : index
    %c0_2 = arith.constant 0 : index
    %c0_3 = arith.constant 0 : index
    %2 = vector.load %arg2[%c1, %c0_2, %c0_3] : memref<4x64x128xf32, #tpu.memory_space<vmem>>, vector<1x64x128xf32>
    %3 = vector.shape_cast %2 : vector<1x64x128xf32> to vector<64x128xf32>
    %4 = arith.addf %1, %3 : vector<64x128xf32>
    %c2 = arith.constant 2 : index
    %c0_4 = arith.constant 0 : index
    %c0_5 = arith.constant 0 : index
    %5 = vector.load %arg2[%c2, %c0_4, %c0_5] : memref<4x64x128xf32, #tpu.memory_space<vmem>>, vector<1x64x128xf32>
    %6 = vector.shape_cast %5 : vector<1x64x128xf32> to vector<64x128xf32>
    %7 = arith.addf %4, %6 : vector<64x128xf32>
    %c3 = arith.constant 3 : index
    %c0_6 = arith.constant 0 : index
    %c0_7 = arith.constant 0 : index
    %8 = vector.load %arg2[%c3, %c0_6, %c0_7] : memref<4x64x128xf32, #tpu.memory_space<vmem>>, vector<1x64x128xf32>
    %9 = vector.shape_cast %8 : vector<1x64x128xf32> to vector<64x128xf32>
    %10 = arith.addf %7, %9 : vector<64x128xf32>
    %cst = arith.constant 2.500000e-01 : f32
    %11 = vector.broadcast %cst : f32 to vector<64x128xf32>
    %12 = arith.mulf %10, %11 : vector<64x128xf32>
    %c0_8 = arith.constant 0 : index
    %c0_9 = arith.constant 0 : index
    %13 = vector.load %arg3[%c0_8, %c0_9] : memref<64x128xf32, #tpu.memory_space<vmem>>, vector<64x128xf32>
    tpu.vector_store %arg3[%c0_8, %c0_9], %12 {strides = array<i32>} : memref<64x128xf32, #tpu.memory_space<vmem>>, vector<64x128xf32>,
    return
  }
  func.func @transform_0(%arg0: i32, %arg1: i32) -> (i32, i32, i32) {
    %c0_i32 = arith.constant 0 : i32
    %c0_i32_0 = arith.constant 0 : i32
    return %c0_i32, %arg0, %arg1 : i32, i32, i32
  }
  func.func @transform_1(%arg0: i32, %arg1: i32) -> (i32, i32) {
    %c0_i32 = arith.constant 0 : i32
    return %arg0, %arg1 : i32, i32
  }
}

</mosaic_0001>

<bundles_post_ra>
// kernel: tpu_custom_call.1
= control target key start
LH: loop header
LB: loop body
LE: loop exit
PB: predicated region body
PF: predicated region fallthrough
CT: control target
= control target key end

     0   :  { %6 = vsyncpa [#allocation3], 0  ;;  %s764_s0 = inlined_call_operand.hbm [shape: f32[4,384,128], index: 0, kind: input, shape index: {}]   ;;  %s765_s1 = inlined_call_operand.hbm [shape: f32[384,128], index: 1, kind: output, shape index: {}]  }
   0x1   :  { %8 = vsyncpa [#allocation3 + $0x1], 0 }
   0x2   :  { %9 = vsyncpa [#allocation4], 0 }
   0x3   :  { %11 = vsyncpa [#allocation4 + $0x1], 0  ;;  %s568_s6 = smov 0   ;;  %s570_s7 = smov 0  }
   0x4   :  { %s572_s8 = smov 0   ;;  %s574_s9 = smov 0  }
   0x5   :  { %s576_s10 = smov 0   ;;  %s578_s11 = smov 0  }
   0x6 LB: > { %s354_s12 = sadd.s32 4294967295, %s548_s11   ;;  %s355_s13 = sadd.s32 4294967294, %s548_s11   ;;  %s548_s11 = sphi %s578_s11, %s17_s11   ;;  %s544_s10 = sphi %s576_s10, %s774_s10   ;;  %s540_s9 = sphi %s574_s9, %s773_s9   ;;  %s536_s8 = sphi %s572_s8, %s772_s8   ;;  %s532_s7 = sphi %s570_s7, %s771_s7   ;;  %s528_s6 = sphi %s568_s6, %s770_s6  }
   0x7   : > { %s29_s14 = sadd.s32 1, %s544_s10  ;;  %s38_s15 = sadd.s32 1, %s536_s8 }
   0x8   : > { %p31_p0 = scmp.ge.s32.totalorder %s29_s14, 6  ;;  %p45_p1 = scmp.ne.s32.totalorder %s536_s8, %s532_s7 }
   0x9   : > { %p46_p2 = scmp.eq.s32.totalorder %s548_s11, 0  ;;  %p51_p3 = scmp.ne.s32.totalorder %s532_s7, %s528_s6 }
   0xa   : > { %s776_s14 = smov (%p31_p0, %s29_s14), 0  ;;  %p52_p5 = scmp.eq.s32.totalorder %s354_s12, 0 }
   0xb   : > { %p609_p4 = por %p46_p2, %p45_p1  ;;  %s33_s17 = ssub.s32 %s544_s10, %s776_s14 }
   0xc   : > { %p77_p6 = scmp.eq.s32.totalorder %s354_s12, 5  ;;  %p36_p7 = scmp.eq.s32.totalorder %s33_s17, 0 }
   0xd   : > { %p615_p8 = por %p52_p5, %p51_p3  ;;  %p83_p10 = scmp.eq.s32.totalorder %s355_s13, 5 }
   0xe   : > { %p619_p9 = por %p77_p6, %p45_p1  ;;  %p357_p12 = scmp.ge.s32.totalorder %s548_s11, 6 }
   0xf   : > { %s624_s20 = scalar_select %p36_p7, %s536_s8, %s38_s15  }
  0x10   : > { %p626_p11 = por %p83_p10, %p51_p3  ;;  %99 = sbr.rel (%p357_p12) target bundleno = 34 (0x22), region = 16 }
  0x15   : > { %s103_s22 = sand.u32 1, %s536_s8   ;;  %s395_s24 = sshll.u32 %s544_s10, 10 }
  0x16   : > { %s358_s23 = sshll.u32 %s103_s22, 8  ;;  %s114_s28 = scalar_lea.hbm %s764_s0, %s395_s24 }
  0x17   : > { %s397_s25 = scalar_select %p609_p4, [#allocation0], [#allocation8] }
  0x18   : > { %s107_s30 = scalar_lea.vmem [#allocation2], %s358_s23  ;;  %s550_s3 = smov 6144  }
  0x19   : > { %s119_s29 = sld [smem:[%s397_s25]]   ;;  %s127_s2 = sshll.u32 %s107_s30, 4  ;;  %s128_s2 = int_to_ptr.vmem [resolvable:$true] %s127_s2 }
  0x1a   : > { %398 = sst [smem:[#allocation7]] (%p609_p4), %s550_s3  ;;  %s551_s4 = smov 1024  }
  0x1b   : > { %399 = sst [smem:[#allocation7 + $0x1]] (%p609_p4), %s551_s4  ;;  %s552_s5 = smov 8  }
  0x1c   : > { %400 = sst [smem:[#allocation7 + $0x2]] (%p609_p4), %s552_s5  ;;  %s553_s12 = smov 128  }
  0x1d   : > { %401 = sst [smem:[#allocation7 + $0x3]] (%p609_p4), %s553_s12  ;;  %s104_s17 = scalar_lea.sflag [#allocation3], %s103_s22 }
  0x1e   : > { %402 = sst [smem:[#allocation7 + $0x4]] (%p609_p4), %s553_s12  ;;  %s554_s23 = smov 131072  }
  0x1f   : > { %s361_s13 = sshll.u32 %s119_s29, 26  ;;  %403 = sst [smem:[#allocation7 + $0x5]] (%p609_p4), %s552_s5 }
  0x20   : > { %s362_s15 = sadd.s32 134217728, %s361_s13 }
  0x21   : > { %404 = dma.general (%p609_p4), %s114_s28, 4096, %s128_s2, %s104_s17, %s554_s23, [#allocation7], %s362_s15, 0  }
  0x22 PF: > { %p363_p13 = scmp.ge.s32.totalorder %s548_s11, 1  ;;  %p148_p0 = scmp.lt.s32.totalorder %s548_s11, 7 }
  0x24   : > { %p149_p1 = pnand %p363_p13, %p148_p0 }
  0x25   : > { %s655_s24 = sand.u32 (!%p149_p1), 1, %s532_s7  }
  0x26   : > { %152 = sbr.rel (%p149_p1) target bundleno = 77 (0x4d), region = 24  ;;  %s364_s25 = sshll.u32 (!%p149_p1), %s655_s24, 8 }
  0x27   : > { %s155_s26 = scalar_lea.sflag (!%p149_p1), [#allocation3], %s655_s24  ;;  %s659_s27 = scalar_lea.vmem (!%p149_p1), [#allocation2], %s364_s25 }
  0x2b   : > { %519 = dma.done.wait (%p615_p8), %s155_s26, 4096  }
  0x2c   : > { %521 = vsyncadd (%p615_p8), %s155_s26, 4294963200  ;;  %v179_v0 = vld [vmem:[%s659_s27] sm:$0xff]  ;;  %v180_v4 = vld [vmem:[%s659_s27 + $0x8] sm:$0xff]  ;;  %s365_s16 = sshll.u32 %s655_s24, 6  ;;  %s396_s28 = sshll.u32 %s540_s9, 10 }
  0x2d   : > { %v366_v1 = vld [vmem:[%s659_s27 + $0x40] sm:$0xff]  ;;  %v367_v5 = vld [vmem:[%s659_s27 + $0x48] sm:$0xff]  ;;  %v181_v9 = vld [vmem:[%s659_s27 + $0x10] sm:$0xff]  ;;  %s694_s18 = scalar_lea.vmem [#allocation5], %s365_s16  ;;  %s714_s2 = scalar_lea.hbm %s765_s1, %s396_s28 }
  0x2e   : > { %v374_v2 = vld [vmem:[%s659_s27 + $0x80] sm:$0xff]  ;;  %v196_v3 = vadd.f32 %v366_v1, %v179_v0  ;;  %v197_v7 = vadd.f32 %v367_v5, %v180_v4  ;;  %v375_v8 = vld [vmem:[%s659_s27 + $0x88] sm:$0xff]  ;;  %v368_v12 = vld [vmem:[%s659_s27 + $0x50] sm:$0xff]  ;;  %s269_s22 = sshll.u32 %s694_s18, 4  ;;  %s255_s9 = scalar_lea.sflag [#allocation4], %s655_s24  ;;  %s709_s22 = int_to_ptr.vmem [resolvable:$true] %s269_s22 }
  0x2f   : > { %v382_v6 = vld [vmem:[%s659_s27 + $0xc0] sm:$0xff]  ;;  %v383_v11 = vld [vmem:[%s659_s27 + $0xc8] sm:$0xff]  ;;  %v376_v13 = vld [vmem:[%s659_s27 + $0x90] sm:$0xff]  ;;  %v198_v15 = vadd.f32 %v368_v12, %v181_v9  ;;  %s468_s3 = scalar_lea.vmem %s709_s22, 1024  ;;  %s555_s4 = smov [#allocation5]  }
  0x30   : > { %v213_v10 = vadd.f32 %v374_v2, %v196_v3  ;;  %v214_v14 = vadd.f32 %v375_v8, %v197_v7  ;;  %v182_v16 = vld [vmem:[%s659_s27 + $0x18] sm:$0xff]  ;;  %v384_v20 = vld [vmem:[%s659_s27 + $0xd0] sm:$0xff]  ;;  %v183_v22 = vld [vmem:[%s659_s27 + $0x20] sm:$0xff]  ;;  %p469_p2 = scmp.ne.s32.totalorder %s709_s22, %s468_s3  ;;  %s472_s5 = sshll.u32 %s555_s4, 4  ;;  %s473_s5 = int_to_ptr.vmem [resolvable:$false] %s472_s5 }
  0x31   : > { %v369_v17 = vld [vmem:[%s659_s27 + $0x58] sm:$0xff]  ;;  %v370_v23 = vld [vmem:[%s659_s27 + $0x60] sm:$0xff]  ;;  %v215_v25 = vadd.f32 %v376_v13, %v198_v15  ;;  %v184_v29 = vld [vmem:[%s659_s27 + $0x28] sm:$0xff]  ;;  %s474_s12 = scalar_lea.vmem %s473_s5, 2048  ;;  %p475_p5 = scmp.lt.s32.totalorder %s709_s22, %s473_s5 }
  0x32   : > { %v377_v18 = vld [vmem:[%s659_s27 + $0x98] sm:$0xff]  ;;  %v230_v19 = vadd.f32 %v382_v6, %v213_v10  ;;  %v199_v21 = vadd.f32 %v369_v17, %v182_v16  ;;  %v231_v24 = vadd.f32 %v383_v11, %v214_v14  ;;  %v200_v27 = vadd.f32 %v370_v23, %v183_v22  ;;  %v378_v28 = vld [vmem:[%s659_s27 + $0xa0] sm:$0xff]  ;;  %v371_v33 = vld [vmem:[%s659_s27 + $0x68] sm:$0xff]  ;;  %p470_p3 = pnand %p469_p2, %p619_p9  ;;  %p476_p6 = scmp.lt.s32.totalorder %s474_s12, %s468_s3 }
  0x33   : > { %v385_v26 = vld [vmem:[%s659_s27 + $0xd8] sm:$0xff]  ;;  %v386_v32 = vld [vmem:[%s659_s27 + $0xe0] sm:$0xff]  ;;  %v379_v34 = vld [vmem:[%s659_s27 + $0xa8] sm:$0xff]  ;;  %v232_v36 = vadd.f32 %v384_v20, %v215_v25  ;;  %v201_v38 = vadd.f32 %v371_v33, %v184_v29 }
  0x34   : > { %v238_v30 = vmul.f32 0.25, %v230_v19  ;;  %v216_v31 = vadd.f32 %v377_v18, %v199_v21  ;;  %v239_v35 = vmul.f32 0.25, %v231_v24  ;;  %v217_v37 = vadd.f32 %v378_v28, %v200_v27  ;;  %v185_v39 = vld [vmem:[%s659_s27 + $0x30] sm:$0xff]  ;;  %v387_v43 = vld [vmem:[%s659_s27 + $0xe8] sm:$0xff]  ;;  %v186_v45 = vld [vmem:[%s659_s27 + $0x38] sm:$0xff]  ;;  %p471_p4 = pneg %p470_p3  ;;  %p477_p7 = por %p476_p6, %p475_p5 }
  0x35   : > { %v372_v40 = vld [vmem:[%s659_s27 + $0x70] sm:$0xff]  ;;  %v373_v46 = vld [vmem:[%s659_s27 + $0x78] sm:$0xff]  ;;  %v240_v47 = vmul.f32 0.25, %v232_v36  ;;  %v218_v49 = vadd.f32 %v379_v34, %v201_v38 }
  0x36   : > { %v380_v41 = vld [vmem:[%s659_s27 + $0xb0] sm:$0xff]  ;;  %246 = vst [vmem:[%s694_s18] sm:$0xff] %v238_v30  ;;  %v233_v42 = vadd.f32 %v385_v26, %v216_v31  ;;  %v202_v44 = vadd.f32 %v372_v40, %v185_v39  ;;  %247 = vst [vmem:[%s694_s18 + $0x8] sm:$0xff] %v239_v35  ;;  %v234_v48 = vadd.f32 %v386_v32, %v217_v37  ;;  %v381_v52 = vld [vmem:[%s659_s27 + $0xb8] sm:$0xff]  ;;  %p478_p8 = pnand %p477_p7, %p471_p4 }
  0x37   : > { %v388_v50 = vld [vmem:[%s659_s27 + $0xf0] sm:$0xff]  ;;  %v203_v51 = vadd.f32 %v373_v46, %v186_v45  ;;  %v389_v55 = vld [vmem:[%s659_s27 + $0xf8] sm:$0xff]  ;;  %248 = vst [vmem:[%s694_s18 + $0x10] sm:$0xff] %v240_v47  ;;  %v235_v57 = vadd.f32 %v387_v43, %v218_v49 }
  0x38   : > { %v241_v53 = vmul.f32 0.25, %v233_v42  ;;  %v219_v54 = vadd.f32 %v380_v41, %v202_v44  ;;  %v242_v56 = vmul.f32 0.25, %v234_v48 }
  0x39   : > { %v220_v58 = vadd.f32 %v381_v52, %v203_v51  ;;  %v243_v60 = vmul.f32 0.25, %v235_v57 }
  0x3a   : > { %249 = vst [vmem:[%s694_s18 + $0x18] sm:$0xff] %v241_v53  ;;  %v236_v59 = vadd.f32 %v388_v50, %v219_v54  ;;  %250 = vst [vmem:[%s694_s18 + $0x20] sm:$0xff] %v242_v56 }
  0x3b   : > { %v237_v61 = vadd.f32 %v389_v55, %v220_v58  ;;  %251 = vst [vmem:[%s694_s18 + $0x28] sm:$0xff] %v243_v60 }
  0x3c   : > { %v244_v62 = vmul.f32 0.25, %v236_v59 }
  0x3d   : > { %v245_v63 = vmul.f32 0.25, %v237_v61 }
  0x3e   : > { %252 = vst [vmem:[%s694_s18 + $0x30] sm:$0xff] %v244_v62 }
  0x3f   : > { %253 = vst [vmem:[%s694_s18 + $0x38] sm:$0xff] %v245_v63 }
  0x40   : > { %481 = shalt.err (!%p478_p8)
}
  0x41   : > { %s482_s13 = scalar_lea.hbm %s714_s2, 1024  ;;  %s486_s23 = scalar_lea.hbm %s765_s1, 6144 }
  0x42   : > { %p483_p10 = scmp.ne.s32.totalorder %s714_s2, %s482_s13  ;;  %p487_p0 = scmp.lt.s32.totalorder %s714_s2, %s765_s1 }
  0x43   : > { %p488_p1 = scmp.lt.s32.totalorder %s486_s23, %s482_s13 }
  0x44   : > { %p484_p12 = pnand %p483_p10, %p619_p9 }
  0x45   : > { %p489_p2 = por %p488_p1, %p487_p0 }
  0x46   : > { %p485_p13 = pneg %p484_p12 }
  0x48   : > { %p490_p3 = pnand %p489_p2, %p485_p13 }
  0x4a   : > { %493 = shalt.err (!%p490_p3)
}
  0x4b   : > { %s556_s27 = smov 128   ;;  %s557_s16 = smov 8  }
  0x4c   : > { %406 = dma.vmem_to_hbm [thread:$0]  (%p619_p9), %s709_s22, 1024, %s714_s2, %s255_s9, %s556_s27, %s556_s27, %s557_s16  }
  0x4d PF: > { %p412_p4 = scmp.ge.s32.totalorder %s548_s11, 2  ;;  %s284_s18 = sand.u32 1, %s528_s6  }
  0x4e   : > { %s285_s28 = scalar_lea.sflag [#allocation4], %s284_s18 }
  0x4f   : > { %p409_p5 = pnand %p412_p4, %p626_p11 }
  0x51   : > { %p410_p6 = pneg %p409_p5 }
  0x53   : > { %523 = dma.done.wait (%p410_p6), %s285_s28, 1024  }
  0x54   : > { %525 = vsyncadd (%p410_p6), %s285_s28, 4294966272  ;;  %s17_s11 = sadd.s32 1, %s548_s11   ;;  %s770_s6 = smov %s532_s7 }
  0x55   : > { %p14_p7 = scmp.ge.s32.totalorder %s17_s11, 8   ;;  %s771_s7 = smov %s536_s8 }
  0x56   : > { %s772_s8 = smov %s624_s20  ;;  %s773_s9 = smov %s544_s10 }
  0x57   : > { %s774_s10 = smov %s776_s14  ;;  %16 = sbr.rel (!%p14_p7) target bundleno = 6 (0x6), region = 77 }
  0x5c   :  { %290 = vsyncpa [#allocation3], 1 }
  0x5d   :  { %292 = vsyncpa [#allocation3 + $0x1], 1 }
  0x5e   :  { %293 = vsyncpa [#allocation4], 1 }
  0x5f   :  { %295 = vsyncpa [#allocation4 + $0x1], 1 }

</bundles_post_ra>
